<compile_context>
chip_gen: v6e
topology: v6e:2x2x1
jax: 0.10.0
libtpu: 0.0.40
codegen_flags: <defaults>
</compile_context>

<pallas_src>
import jax
import jax.numpy as jnp
import numpy as np
from jax.experimental import pallas as pl
from jax.experimental.pallas import tpu as pltpu


def _stage_kernel(x_ref, w_ref, b_ref, g_ref, be_ref, h_ref, *pool_refs):
    """One conv3(pad=1) -> BN1d(train) -> ReLU stage; optionally MaxPool1d(2).

    x_ref : (N, L+2, Cin)  length-padded input (zero rows at 0 and L+1)
    w_ref : (3, Cin, Ct)   conv weights for this output-channel tile
    b_ref, g_ref, be_ref : (1, Ct) conv bias / BN gamma / BN beta
    h_ref : (N*L, Ct)      conv->BN->ReLU output slab (the "skip" for stage 2)
    pool_refs (optional)  : ((N*L//2, Ct),) MaxPool1d(2) output slab
    """
    N, Lp2, Cin = x_ref.shape
    L = Lp2 - 2
    NL = N * L
    eps = jnp.float32(1e-5)

    # ---- conv: 3 shifted (N*L, Cin) @ (Cin, Ct) MXU matmuls ---------------
    acc = jnp.dot(x_ref[:, 0:L, :].reshape(NL, Cin), w_ref[0],
                  preferred_element_type=jnp.float32)
    acc = acc + jnp.dot(x_ref[:, 1:L + 1, :].reshape(NL, Cin), w_ref[1],
                        preferred_element_type=jnp.float32)
    acc = acc + jnp.dot(x_ref[:, 2:L + 2, :].reshape(NL, Cin), w_ref[2],
                        preferred_element_type=jnp.float32)
    y = acc + b_ref[...]                                        # (N*L, Ct)

    # ---- BatchNorm1d (training mode, biased variance) + ReLU --------------
    inv_nl = jnp.float32(1.0 / NL)
    mean = jnp.sum(y, axis=0, keepdims=True) * inv_nl           # (1, Ct)
    d = y - mean
    var = jnp.sum(d * d, axis=0, keepdims=True) * inv_nl        # (1, Ct)
    h = jnp.maximum(d * jax.lax.rsqrt(var + eps) * g_ref[...] + be_ref[...],
                    0.0)

    h_ref[...] = h.astype(h_ref.dtype)                          # one full store

    # ---- MaxPool1d(kernel=2, stride=2), vectorized ------------------------
    if pool_refs:
        pool_ref = pool_refs[0]
        # Each sample contributes an even number (L) of consecutive rows, so
        # pooling pairs of flat rows never crosses sample boundaries.
        even = h_ref[pl.ds(0, NL // 2, stride=2), :]
        odd = h_ref[pl.ds(1, NL // 2, stride=2), :]
        pool_ref[...] = jnp.maximum(even, odd).astype(pool_ref.dtype)


def _run_stage(x_nlc, w, b, g, be, *, with_pool):
    """Run one stage. x_nlc: (N, L, Cin); w: (3, Cin, Cout)."""
    N, L, Cin = x_nlc.shape
    Cout = w.shape[2]
    NL = N * L

    # Output-channel tile: BN stats are per-channel, so tiles are independent.
    tc = Cout if Cout <= 128 else 128
    assert Cout % tc == 0, "Cout must be a multiple of 128 when Cout > 128"
    grid = (Cout // tc,)

    x_pad = jnp.pad(x_nlc.astype(jnp.float32), ((0, 0), (1, 1), (0, 0)))
    row = lambda v: v.reshape(1, Cout).astype(jnp.float32)

    in_specs = [
        pl.BlockSpec((N, L + 2, Cin), lambda j: (0, 0, 0)),     # full input
        pl.BlockSpec((3, Cin, tc), lambda j: (0, 0, j)),        # weight tile
        pl.BlockSpec((1, tc), lambda j: (0, j)),                # bias
        pl.BlockSpec((1, tc), lambda j: (0, j)),                # gamma
        pl.BlockSpec((1, tc), lambda j: (0, j)),                # beta
    ]
    out_shape = [jax.ShapeDtypeStruct((NL, Cout), jnp.float32)]
    out_specs = [pl.BlockSpec((NL, tc), lambda j: (0, j))]
    if with_pool:
        out_shape.append(jax.ShapeDtypeStruct((NL // 2, Cout), jnp.float32))
        out_specs.append(pl.BlockSpec((NL // 2, tc), lambda j: (0, j)))

    # Explicit VMEM budget from the real block sizes (double-buffered blocks
    # plus headroom), capped at 64 MiB so it also fits v7x.
    per_step = 4 * (N * (L + 2) * Cin + 3 * Cin * tc + 3 * tc
                    + NL * tc + (NL // 2) * tc * int(with_pool))
    vmem_limit = int(min(max(2 * per_step + (8 << 20), 16 << 20), 64 << 20))

    return pl.pallas_call(
        _stage_kernel,
        grid=grid,
        in_specs=in_specs,
        out_specs=tuple(out_specs),
        out_shape=tuple(out_shape),
        compiler_params=pltpu.CompilerParams(
            dimension_semantics=("parallel",),
            vmem_limit_bytes=vmem_limit),
    )(x_pad, w.astype(jnp.float32), row(b), row(g), row(be))


def downblock_forward(x_ncl, params):
    """x_ncl: (N, C_in, L) PyTorch layout. Returns (pooled, skip) in NCL."""
    N, Cin, L = x_ncl.shape
    Cout = params["w1"].shape[2]
    x_nlc = jnp.transpose(x_ncl, (0, 2, 1))

    h1 = _run_stage(x_nlc, params["w1"], params["b1"],
                    params["g1"], params["be1"], with_pool=False)[0]
    skip2d, pool2d = _run_stage(h1.reshape(N, L, Cout), params["w2"],
                                params["b2"], params["g2"], params["be2"],
                                with_pool=True)

    skip = jnp.transpose(skip2d.reshape(N, L, Cout), (0, 2, 1))
    pooled = jnp.transpose(pool2d.reshape(N, L // 2, Cout), (0, 2, 1))
    return pooled, skip


def ref_forward(x_ncl, params):
    """Plain-JAX reference (PyTorch semantics) for verification."""
    def conv1d(x, w, b):                               # x (N,C,L), w (3,Cin,Cout)
        wp = jnp.transpose(w, (2, 1, 0))               # (Cout, Cin, 3)
        y = jax.lax.conv_general_dilated(
            x, wp, window_strides=(1,), padding=((1, 1),),
            dimension_numbers=("NCH", "OIH", "NCH"))
        return y + b[None, :, None]

    def bn_relu(x, g, be):
        mean = jnp.mean(x, axis=(0, 2), keepdims=True)
        var = jnp.mean((x - mean) ** 2, axis=(0, 2), keepdims=True)
        y = (x - mean) * jax.lax.rsqrt(var + 1e-5) * g[None, :, None] \
            + be[None, :, None]
        return jnp.maximum(y, 0.0)

    h = bn_relu(conv1d(x_ncl, params["w1"], params["b1"]),
                params["g1"], params["be1"])
    s = bn_relu(conv1d(h, params["w2"], params["b2"]),
                params["g2"], params["be2"])
    N, C, L = s.shape
    pooled = jnp.max(s.reshape(N, C, L // 2, 2), axis=-1)
    return pooled, s


if __name__ == "__main__":
    N, Cin, Cout, L = 2, 4, 8, 16
    key = jax.random.PRNGKey(0)
    ks = jax.random.split(key, 9)
    params = dict(
        w1=0.2 * jax.random.normal(ks[0], (3, Cin, Cout), jnp.float32),
        b1=0.1 * jax.random.normal(ks[1], (Cout,), jnp.float32),
        g1=1.0 + 0.1 * jax.random.normal(ks[2], (Cout,), jnp.float32),
        be1=0.05 * jax.random.normal(ks[3], (Cout,), jnp.float32),
        w2=0.2 * jax.random.normal(ks[4], (3, Cout, Cout), jnp.float32),
        b2=0.1 * jax.random.normal(ks[5], (Cout,), jnp.float32),
        g2=1.0 + 0.1 * jax.random.normal(ks[6], (Cout,), jnp.float32),
        be2=0.05 * jax.random.normal(ks[7], (Cout,), jnp.float32),
    )
    x = jax.random.normal(ks[8], (N, Cin, L), jnp.float32)   # PyTorch NCL input

    pooled, skip = jax.block_until_ready(downblock_forward(x, params))
    ref_pooled, ref_skip = ref_forward(x, params)

    assert pooled.shape == (N, Cout, L // 2) and skip.shape == (N, Cout, L)
    np.testing.assert_allclose(np.asarray(pooled), np.asarray(ref_pooled),
                               rtol=1e-4, atol=1e-4)
    np.testing.assert_allclose(np.asarray(skip), np.asarray(ref_skip),
                               rtol=1e-4, atol=1e-4)
    print("KERNEL_OK")
</pallas_src>

<mosaic_0001>
module attributes {stable_mosaic.version = 11 : i64} {
  func.func @_stage_kernel(%arg0: i32, %arg1: memref<2x18x4xf32, #tpu.memory_space<vmem>>, %arg2: memref<3x4x8xf32, #tpu.memory_space<vmem>>, %arg3: memref<1x8xf32, #tpu.memory_space<vmem>>, %arg4: memref<1x8xf32, #tpu.memory_space<vmem>>, %arg5: memref<1x8xf32, #tpu.memory_space<vmem>>, %arg6: memref<32x8xf32, #tpu.memory_space<vmem>>) attributes {dimension_semantics = [#tpu.dimension_semantics<parallel>], iteration_bounds = array<i64: 1>, scalar_prefetch = 0 : i64, scratch_operands = 0 : i64, tpu.core_type = #tpu.core_type<tc>, window_params = [{pipeline_mode = #tpu.pipeline_mode<synchronous>, transform_indices = @transform_0, window_bounds = array<i64: 2, 18, 4>}, {transform_indices = @transform_1, window_bounds = array<i64: 3, 4, 8>}, {transform_indices = @transform_2, window_bounds = array<i64: 1, 8>}, {transform_indices = @transform_3, window_bounds = array<i64: 1, 8>}, {transform_indices = @transform_4, window_bounds = array<i64: 1, 8>}, {transform_indices = @transform_5, window_bounds = array<i64: 32, 8>}]} {
    %c0 = arith.constant 0 : index
    %c0_0 = arith.constant 0 : index
    %c0_1 = arith.constant 0 : index
    %0 = vector.load %arg1[%c0, %c0_0, %c0_1] : memref<2x18x4xf32, #tpu.memory_space<vmem>>, vector<2x16x4xf32>
    %1 = vector.shape_cast %0 : vector<2x16x4xf32> to vector<32x4xf32>
    %c0_2 = arith.constant 0 : index
    %c0_3 = arith.constant 0 : index
    %c0_4 = arith.constant 0 : index
    %2 = vector.load %arg2[%c0_2, %c0_3, %c0_4] : memref<3x4x8xf32, #tpu.memory_space<vmem>>, vector<1x4x8xf32>
    %3 = vector.shape_cast %2 : vector<1x4x8xf32> to vector<4x8xf32>
    %cst = arith.constant dense<0.000000e+00> : vector<32x8xf32>
    %4 = tpu.matmul %1, %3, %cst {dimension_numbers = #tpu.dot_dimension_numbers<[1], [0], [0], [1], [0, 0, 1, 1], [], []>} : vector<32x4xf32>, vector<4x8xf32>, vector<32x8xf32> -> vector<32x8xf32>
    %c0_5 = arith.constant 0 : index
    %c1 = arith.constant 1 : index
    %c0_6 = arith.constant 0 : index
    %5 = vector.load %arg1[%c0_5, %c1, %c0_6] : memref<2x18x4xf32, #tpu.memory_space<vmem>>, vector<2x16x4xf32>
    %6 = vector.shape_cast %5 : vector<2x16x4xf32> to vector<32x4xf32>
    %c1_7 = arith.constant 1 : index
    %c0_8 = arith.constant 0 : index
    %c0_9 = arith.constant 0 : index
    %7 = vector.load %arg2[%c1_7, %c0_8, %c0_9] : memref<3x4x8xf32, #tpu.memory_space<vmem>>, vector<1x4x8xf32>
    %8 = vector.shape_cast %7 : vector<1x4x8xf32> to vector<4x8xf32>
    %cst_10 = arith.constant dense<0.000000e+00> : vector<32x8xf32>
    %9 = tpu.matmul %6, %8, %cst_10 {dimension_numbers = #tpu.dot_dimension_numbers<[1], [0], [0], [1], [0, 0, 1, 1], [], []>} : vector<32x4xf32>, vector<4x8xf32>, vector<32x8xf32> -> vector<32x8xf32>
    %10 = arith.addf %4, %9 : vector<32x8xf32>
    %c0_11 = arith.constant 0 : index
    %c2 = arith.constant 2 : index
    %c0_12 = arith.constant 0 : index
    %11 = vector.load %arg1[%c0_11, %c2, %c0_12] : memref<2x18x4xf32, #tpu.memory_space<vmem>>, vector<2x16x4xf32>
    %12 = vector.shape_cast %11 : vector<2x16x4xf32> to vector<32x4xf32>
    %c2_13 = arith.constant 2 : index
    %c0_14 = arith.constant 0 : index
    %c0_15 = arith.constant 0 : index
    %13 = vector.load %arg2[%c2_13, %c0_14, %c0_15] : memref<3x4x8xf32, #tpu.memory_space<vmem>>, vector<1x4x8xf32>
    %14 = vector.shape_cast %13 : vector<1x4x8xf32> to vector<4x8xf32>
    %cst_16 = arith.constant dense<0.000000e+00> : vector<32x8xf32>
    %15 = tpu.matmul %12, %14, %cst_16 {dimension_numbers = #tpu.dot_dimension_numbers<[1], [0], [0], [1], [0, 0, 1, 1], [], []>} : vector<32x4xf32>, vector<4x8xf32>, vector<32x8xf32> -> vector<32x8xf32>
    %16 = arith.addf %10, %15 : vector<32x8xf32>
    %c0_17 = arith.constant 0 : index
    %c0_18 = arith.constant 0 : index
    %17 = vector.load %arg3[%c0_17, %c0_18] : memref<1x8xf32, #tpu.memory_space<vmem>>, vector<1x8xf32>
    %18 = vector.broadcast %17 : vector<1x8xf32> to vector<32x8xf32>
    %19 = arith.addf %16, %18 : vector<32x8xf32>
    %cst_19 = arith.constant dense<0.000000e+00> : vector<8xf32>
    %20 = vector.multi_reduction <add>, %19, %cst_19 [0] : vector<32x8xf32> to vector<8xf32>
    %21 = vector.shape_cast %20 : vector<8xf32> to vector<1x8xf32>
    %cst_20 = arith.constant 3.125000e-02 : f32
    %22 = vector.broadcast %cst_20 : f32 to vector<1x8xf32>
    %23 = arith.mulf %21, %22 : vector<1x8xf32>
    %24 = vector.broadcast %23 : vector<1x8xf32> to vector<32x8xf32>
    %25 = arith.subf %19, %24 : vector<32x8xf32>
    %26 = arith.mulf %25, %25 : vector<32x8xf32>
    %cst_21 = arith.constant dense<0.000000e+00> : vector<8xf32>
    %27 = vector.multi_reduction <add>, %26, %cst_21 [0] : vector<32x8xf32> to vector<8xf32>
    %28 = vector.shape_cast %27 : vector<8xf32> to vector<1x8xf32>
    %cst_22 = arith.constant 3.125000e-02 : f32
    %29 = vector.broadcast %cst_22 : f32 to vector<1x8xf32>
    %30 = arith.mulf %28, %29 : vector<1x8xf32>
    %cst_23 = arith.constant 9.99999974E-6 : f32
    %31 = vector.broadcast %cst_23 : f32 to vector<1x8xf32>
    %32 = arith.addf %30, %31 : vector<1x8xf32>
    %33 = math.rsqrt %32 : vector<1x8xf32>
    %34 = vector.broadcast %33 : vector<1x8xf32> to vector<32x8xf32>
    %35 = arith.mulf %25, %34 : vector<32x8xf32>
    %c0_24 = arith.constant 0 : index
    %c0_25 = arith.constant 0 : index
    %36 = vector.load %arg4[%c0_24, %c0_25] : memref<1x8xf32, #tpu.memory_space<vmem>>, vector<1x8xf32>
    %37 = vector.broadcast %36 : vector<1x8xf32> to vector<32x8xf32>
    %38 = arith.mulf %35, %37 : vector<32x8xf32>
    %c0_26 = arith.constant 0 : index
    %c0_27 = arith.constant 0 : index
    %39 = vector.load %arg5[%c0_26, %c0_27] : memref<1x8xf32, #tpu.memory_space<vmem>>, vector<1x8xf32>
    %40 = vector.broadcast %39 : vector<1x8xf32> to vector<32x8xf32>
    %41 = arith.addf %38, %40 : vector<32x8xf32>
    %cst_28 = arith.constant 0.000000e+00 : f32
    %42 = vector.broadcast %cst_28 : f32 to vector<32x8xf32>
    %43 = arith.maximumf %41, %42 : vector<32x8xf32>
    %c0_29 = arith.constant 0 : index
    %c0_30 = arith.constant 0 : index
    %44 = vector.load %arg6[%c0_29, %c0_30] : memref<32x8xf32, #tpu.memory_space<vmem>>, vector<32x8xf32>
    tpu.vector_store %arg6[%c0_29, %c0_30], %43 {strides = array<i32>} : memref<32x8xf32, #tpu.memory_space<vmem>>, vector<32x8xf32>,
    return
  }
  func.func @transform_0(%arg0: i32) -> (i32, i32, i32) {
    %c0_i32 = arith.constant 0 : i32
    %c0_i32_0 = arith.constant 0 : i32
    %c0_i32_1 = arith.constant 0 : i32
    %c0_i32_2 = arith.constant 0 : i32
    return %c0_i32, %c0_i32_0, %c0_i32_1 : i32, i32, i32
  }
  func.func @transform_1(%arg0: i32) -> (i32, i32, i32) {
    %c0_i32 = arith.constant 0 : i32
    %c0_i32_0 = arith.constant 0 : i32
    %c0_i32_1 = arith.constant 0 : i32
    return %c0_i32, %c0_i32_0, %arg0 : i32, i32, i32
  }
  func.func @transform_2(%arg0: i32) -> (i32, i32) {
    %c0_i32 = arith.constant 0 : i32
    %c0_i32_0 = arith.constant 0 : i32
    return %c0_i32, %arg0 : i32, i32
  }
  func.func @transform_3(%arg0: i32) -> (i32, i32) {
    %c0_i32 = arith.constant 0 : i32
    %c0_i32_0 = arith.constant 0 : i32
    return %c0_i32, %arg0 : i32, i32
  }
  func.func @transform_4(%arg0: i32) -> (i32, i32) {
    %c0_i32 = arith.constant 0 : i32
    %c0_i32_0 = arith.constant 0 : i32
    return %c0_i32, %arg0 : i32, i32
  }
  func.func @transform_5(%arg0: i32) -> (i32, i32) {
    %c0_i32 = arith.constant 0 : i32
    %c0_i32_0 = arith.constant 0 : i32
    return %c0_i32, %arg0 : i32, i32
  }
}

</mosaic_0001>

<bundles_post_ra>
// kernel: tpu_custom_call.1
= control target key start
LH: loop header
LB: loop body
LE: loop exit
PB: predicated region body
PF: predicated region fallthrough
CT: control target
= control target key end

     0   :  { %vm44_vm0 = vcmask 1043456   ;;  %vm31_vm1 = vcmask 31744   ;;  %vm354_vm2 = vcmask 64512   ;;  %s622_s1 = inlined_call_operand.vmem [shape: f32[3,4,8], index: 1, kind: input, shape index: {}]   ;;  %s623_s0 = inlined_call_operand.vmem [shape: f32[2,18,4], index: 0, kind: input, shape index: {}]   ;;  %s624_s2 = inlined_call_operand.vmem [shape: f32[1,8], index: 2, kind: input, shape index: {}]   ;;  %s625_s3 = inlined_call_operand.vmem [shape: f32[1,8], index: 3, kind: input, shape index: {}]   ;;  %s626_s4 = inlined_call_operand.vmem [shape: f32[1,8], index: 4, kind: input, shape index: {}]   ;;  %s627_s5 = inlined_call_operand.vmem [shape: f32[32,8], index: 5, kind: output, shape index: {}]  }
   0x1   :  { %v431_v0 = vld [vmem:[%s622_s1 + $0x4] sm:$0xf]  ;;  %v27_v1 = vld [vmem:[%s623_s0 + $0x19] sm:$0xff]  ;;  %v26_v5 = vld [vmem:[%s623_s0 + $0x9] sm:$0xff] }
   0x2   :  { %v25_v2 = vld [vmem:[%s623_s0 + $0x1] sm:$0xff]  ;;  %490 = vmatprep.subr.msk.mxu1 %vm44_vm0, %v431_v0  ;;  %466 = vmatprep.subr.msk.mxu0 %vm44_vm0, %v431_v0  ;;  %v234_v10 = vld [vmem:[%s623_s0 + $0xa] sm:$0xff]  ;;  %v22_v11 = vld [vmem:[%s623_s0 + $0x18] sm:$0xff] }
   0x3   :  { %v28_v3 = vld [vmem:[%s623_s0 + $0x21] sm:$0xff]  ;;  %491 = vmatpush3.msk.msra.mxu1 %vm44_vm0, %v431_v0  ;;  %471 = vmatprep.mubr.msk.f32.mxu1 %vm31_vm1, %v27_v1  ;;  %v448_v26 = vld [vmem:[%s624_s2] ss:$0 sm:$0xff] }
   0x4   :  { %v24_v4 = vld [vmem:[%s622_s1] sm:$0xf]  ;;  %467 = vmatpush3.msk.msra.mxu0 %vm44_vm0, %v431_v0  ;;  %468 = vmatprep.mubr.msk.f32.mxu0 %vm31_vm1, %v25_v2  ;;  %v442_v6 = vld [vmem:[%s622_s1 + $0x8] sm:$0xf] }
   0x5   :  { %v20_v7 = vld [vmem:[%s623_s0] sm:$0xff]  ;;  %472 = vmatmul.mubr.msk.f32.vlgmr.msra.gmra.mxu1 %vm31_vm1, %v28_v3  ;;  %474 = vmatprep.subr.msk.mxu1 %vm44_vm0, %v24_v4  ;;  %v21_v9 = vld [vmem:[%s623_s0 + $0x8] sm:$0xff] }
   0x6   :  { %v233_v8 = vld [vmem:[%s623_s0 + $0x2] sm:$0xff]  ;;  %469 = vmatmul.mubr.msk.f32.vlgmr.msra.gmra.mxu0 %vm31_vm1, %v26_v5  ;;  %475 = vmatpush3.msk.msra.mxu1 %vm44_vm0, %v24_v4  ;;  %v235_v12 = vld [vmem:[%s623_s0 + $0x1a] sm:$0xff] }
   0x7   :  { %482 = vmatprep.subr.msk.mxu0 %vm44_vm0, %v442_v6  ;;  %476 = vmatprep.mubr.msk.f32.mxu1 %vm31_vm1, %v20_v7  ;;  %v23_v13 = vld [vmem:[%s623_s0 + $0x20] sm:$0xff] }
   0x8   :  { %483 = vmatpush3.msk.msra.mxu0 %vm44_vm0, %v442_v6  ;;  %484 = vmatprep.mubr.msk.f32.mxu0 %vm31_vm1, %v233_v8  ;;  %v236_v14 = vld [vmem:[%s623_s0 + $0x22] sm:$0xff] }
   0x9   :  { %477 = vmatmul.mubr.msk.f32.vlgmr.msra.gmra.mxu1 %vm31_vm1, %v21_v9 }
   0xa   :  { %485 = vmatmul.mubr.msk.f32.vlgmr.msra.gmra.mxu0 %vm31_vm1, %v234_v10  ;;  %479 = vmatprep.mubr.msk.f32.mxu1 %vm31_vm1, %v22_v11 }
   0xb   :  { %487 = vmatprep.mubr.msk.f32.mxu0 %vm31_vm1, %v235_v12 }
   0xd   :  { %480 = vmatmul.mubr.msk.f32.gmra.mxu1 %vm31_vm1, %v23_v13 }
   0xe   :  { %488 = vmatmul.mubr.msk.f32.gmra.mxu0 %vm31_vm1, %v236_v14  ;;  %v449_v14 = vld [vmem:[%s625_s3] ss:$0 sm:$0xff] }
  0xc5   :  { %v473_v15 = vpop.f32.mrf.mxu1 }
  0xc6   :  { %v470_v16 = vpop.f32.mrf.mxu0 }
  0xc7   :  { %v124_v17 = vpop.f32.mrf.mxu1 }
  0xc8   :  { %v114_v18 = vpop.f32.mrf.mxu0 }
  0xc9   :  { %v478_v19 = vpop.f32.mrf.mxu1 }
  0xca   :  { %v220_v20 = vadd.f32 %v478_v19, %v470_v16  ;;  %v486_v21 = vpop.f32.mrf.mxu0  ;;  %v450_v19 = vld [vmem:[%s626_s4] ss:$0 sm:$0xff] }
  0xcb   :  { %v214_v22 = vpop.f32.mrf.mxu1 }
  0xcc   :  { %v340_v23 = vadd.f32 %v486_v21, %v220_v20  ;;  %v215_v24 = vadd.f32 %v214_v22, %v114_v18  ;;  %v320_v25 = vpop.f32.mrf.mxu0 }
  0xcd   :  { %v481_v27 = vpop.f32.mrf.mxu1 }
  0xce   :  { %v339_v28 = vadd.f32 %v320_v25, %v215_v24  ;;  %v230_v29 = vadd.f32 %v481_v27, %v473_v15  ;;  %v489_v30 = vpop.f32.mrf.mxu0  ;;  %v351_v32 = vadd.f32 %v448_v26, %v340_v23 }
  0xcf   :  { %v224_v31 = vpop.f32.mrf.mxu1 }
  0xd0   :  { %v350_v33 = vadd.f32 %v448_v26, %v339_v28  ;;  %v342_v34 = vadd.f32 %v489_v30, %v230_v29  ;;  %v225_v35 = vadd.f32 %v224_v31, %v124_v17  ;;  %v330_v36 = vpop.f32.mrf.mxu0  ;;  %v356_v39 = vsel %vm354_vm2, %v351_v32, 0.0 }
  0xd2   :  { %v355_v37 = vsel %vm354_vm2, %v350_v33, 0.0  ;;  %v341_v38 = vadd.f32 %v330_v36, %v225_v35  ;;  %v353_v40 = vadd.f32 %v448_v26, %v342_v34 }
  0xd3   :  { %v357_v42 = vadd.f32 %v356_v39, %v355_v37 }
  0xd4   :  { %v352_v41 = vadd.f32 %v448_v26, %v341_v38  ;;  %v360_v45 = vsel %vm354_vm2, %v353_v40, 0.0 }
  0xd6   :  { %v358_v43 = vsel %vm354_vm2, %v352_v41, 0.0 }
  0xd7   :  { %v359_v44 = vadd.f32 %v358_v43, %v357_v42 }
  0xd9   :  { %v361_v46 = vadd.f32 %v360_v45, %v359_v44 }
  0xdb   :  { %v362_v47 = vrot.slane %v361_v46, 4 }
  0xdd   :  { %v363_v48 = vadd.f32 %v362_v47, %v361_v46 }
  0xdf   :  { %v364_v49 = vrot.slane %v363_v48, 2 }
  0xe1   :  { %v365_v50 = vadd.f32 %v364_v49, %v363_v48 }
  0xe3   :  { %v366_v51 = vrot.slane %v365_v50, 1 }
  0xe5   :  { %v367_v52 = vadd.f32 %v366_v51, %v365_v50 }
  0xe7   :  { %v368_v53 = vmul.f32 0.03125, %v367_v52 }
  0xe9   :  { %v369_v54 = vsub.f32 %v350_v33, %v368_v53  ;;  %v370_v55 = vsub.f32 %v351_v32, %v368_v53  ;;  %v371_v56 = vsub.f32 %v352_v41, %v368_v53  ;;  %v372_v57 = vsub.f32 %v353_v40, %v368_v53 }
  0xeb   :  { %v373_v58 = vmul.f32 %v369_v54, %v369_v54  ;;  %v374_v59 = vmul.f32 %v370_v55, %v370_v55  ;;  %v375_v60 = vmul.f32 %v371_v56, %v371_v56  ;;  %v376_v61 = vmul.f32 %v372_v57, %v372_v57 }
  0xed   :  { %v377_v62 = vsel %vm354_vm2, %v373_v58, 0.0  ;;  %v378_v63 = vsel %vm354_vm2, %v374_v59, 0.0  ;;  %v380_v1 = vsel %vm354_vm2, %v375_v60, 0.0  ;;  %v382_v3 = vsel %vm354_vm2, %v376_v61, 0.0 }
  0xee   :  { %v379_v0 = vadd.f32 %v378_v63, %v377_v62 }
  0xf0   :  { %v381_v2 = vadd.f32 %v380_v1, %v379_v0 }
  0xf2   :  { %v383_v4 = vadd.f32 %v382_v3, %v381_v2 }
  0xf4   :  { %v384_v5 = vrot.slane %v383_v4, 4 }
  0xf6   :  { %v385_v6 = vadd.f32 %v384_v5, %v383_v4 }
  0xf8   :  { %v386_v7 = vrot.slane %v385_v6, 2 }
  0xfa   :  { %v387_v8 = vadd.f32 %v386_v7, %v385_v6 }
  0xfc   :  { %v388_v9 = vrot.slane %v387_v8, 1 }
  0xfe   :  { %v389_v10 = vadd.f32 %v388_v9, %v387_v8 }
 0x100   :  { %v390_v11 = vmul.f32 0.03125, %v389_v10 }
 0x102   :  { %v391_v12 = vadd.f32 1e-05, %v390_v11 }
 0x104   :  { %492 = vrsqrt.f32 %v391_v12 }
 0x111   :  { %v493_v13 = vpop.eup %492 }
 0x112   :  { %v393_v15 = vmul.f32 %v493_v13, %v369_v54  ;;  %v394_v16 = vmul.f32 %v493_v13, %v370_v55  ;;  %v395_v17 = vmul.f32 %v493_v13, %v371_v56  ;;  %v396_v18 = vmul.f32 %v493_v13, %v372_v57 }
 0x114   :  { %v404_v20 = vmul.f32 %v449_v14, %v393_v15  ;;  %v405_v21 = vmul.f32 %v449_v14, %v394_v16  ;;  %v406_v22 = vmul.f32 %v449_v14, %v395_v17  ;;  %v407_v23 = vmul.f32 %v449_v14, %v396_v18 }
 0x116   :  { %v415_v24 = vadd.f32 %v450_v19, %v404_v20  ;;  %v416_v25 = vadd.f32 %v450_v19, %v405_v21  ;;  %v417_v26 = vadd.f32 %v450_v19, %v406_v22  ;;  %v418_v27 = vadd.f32 %v450_v19, %v407_v23 }
 0x118   :  { %v419_v28 = vmax.f32 %v415_v24, 0.0  ;;  %v420_v29 = vmax.f32 %v416_v25, 0.0  ;;  %v421_v30 = vmax.f32 %v417_v26, 0.0  ;;  %v422_v31 = vmax.f32 %v418_v27, 0.0 }
 0x11a   :  { %423 = vst.msk [vmem:[%s627_s5] sm:$0xff] %vm354_vm2, %v419_v28  ;;  %424 = vst.msk [vmem:[%s627_s5 + $0x8] sm:$0xff] %vm354_vm2, %v420_v29 }
 0x11b   :  { %425 = vst.msk [vmem:[%s627_s5 + $0x10] sm:$0xff] %vm354_vm2, %v421_v30  ;;  %426 = vst.msk [vmem:[%s627_s5 + $0x18] sm:$0xff] %vm354_vm2, %v422_v31 }

</bundles_post_ra>
